<compile_context>
chip_gen: v7x
topology: tpu7x:2x2x1
jax: 0.10.0
libtpu: 0.0.40
codegen_flags: <defaults>
</compile_context>

<pallas_src>
import functools

import jax
import jax.numpy as jnp
from jax.experimental import pallas as pl
from jax.experimental.pallas import tpu as pltpu

# ---- small shapes consistent with the module (real MANO: J=21, V=778, Vsub=195) --
B, J, V, VSUB = 2, 21, 64, 16
STEPS = 2

LOSS_W = dict(
    vertices=1.0, vertices_sub=0.5,
    joints_3d=1.0, joints_3d_from_mesh=0.5,
    joints_hm=0.1,
    joints_2d=1.0, joints_2d_from_mesh=0.5,
)


# --------------------------- in-kernel helpers -------------------------------------
def _smooth_l1(a, b, beta=0.01):
    d = jnp.abs(a - b)
    return jnp.where(d < beta, 0.5 * d * d / beta, d - 0.5 * beta)


# --------------------------------- the kernel --------------------------------------
def _mano_loss_kernel(slab_ref, pvgt_ref, regcat_ref, out_ref, *, jn, vsn, b3):
    # Per-step blocks, coordinate-rows-first.
    slab = slab_ref[0]            # (B3, 4*J + 4 + VSUB)   single small DMA
    pvgt = pvgt_ref[0]            # (2*B3, V)   rows [0:B3]=pred_verts, [B3:]=gt_verts
    regcat = regcat_ref[...]      # (V, J+VSUB) [jreg^T | dsub^T], resident across steps

    # Carve the slab up with static slices (everything fits in one vreg tile).
    gtj = slab[:, 0:jn]                       # gt 3d joints
    pj = slab[:, jn:2 * jn]                   # pred 3d joints
    gt2d = slab[:, 2 * jn:3 * jn]             # gt 2d joints (z row = 0)
    hm = slab[:, 3 * jn:4 * jn]               # heatmap joints (z row = 0)
    aux = slab[:, 4 * jn:4 * jn + 4]          # [mask, cam_scale_row, cam_trans_row, 0]
    pvs = slab[:, 4 * jn + 4:4 * jn + 4 + vsn]  # pred sub-vertices

    mask = aux[:, 0:1]            # (B3, 1)
    cam_s = aux[:, 1:2]           # (B3, 1)   [s, s, 0] per batch
    cam_t = aux[:, 2:3]           # (B3, 1)   [tx, ty, 0] per batch

    pv = pvgt[:b3]                # (B3, V) pred vertices
    gtv = pvgt[b3:]               # (B3, V) gt vertices

    # --- fused MXU matmul: joint regressor + mesh downsample in one pass -----------
    res = jnp.dot(pvgt, regcat, preferred_element_type=jnp.float32)   # (2*B3, J+VSUB)
    pjm = res[:b3, 0:jn]            # pred joints regressed from pred mesh
    gtvs = res[b3:, jn:jn + vsn]    # gt sub-vertices (downsampled gt mesh)

    # --- root alignment (lane 0 is joint 0) -----------------------------------------
    gt_root = gtj[:, 0:1]
    pj_root = pj[:, 0:1]
    pjm_root = pjm[:, 0:1]

    def lane_sum(x):
        return jnp.sum(x, axis=1, keepdims=True)      # (B3, 1) lane reduce

    # Differences fused into the loss args (raw & aligned copies not live together).
    s3d = lane_sum(_smooth_l1(gtj - gt_root, pj - pj_root))
    s3dreg = lane_sum(_smooth_l1(gtj - gt_root, pjm - pjm_root))
    sv = lane_sum(_smooth_l1(gtv - gt_root, pv - pjm_root))
    svs = lane_sum(_smooth_l1(gtvs - gt_root, pvs - pjm_root))
    shm = lane_sum((hm - gt2d) ** 2)

    # --- weak-perspective camera 2D losses (z rows zeroed via cam_s row = 0) --------
    pj_al = pj - pj_root
    pjm_al = pjm - pjm_root
    s2d = lane_sum((gt2d - cam_s * (pj_al + cam_t)) ** 2)
    s2dreg = lane_sum((gt2d - cam_s * (pjm_al + cam_t)) ** 2)

    # --- one (B3, 8) tile, one mask multiply, ONE sublane reduce ---------------------
    tile = jnp.concatenate(
        [s3d, s3dreg, sv, svs, shm, s2d, s2dreg, jnp.zeros_like(s3d)], axis=1)  # (B3, 8)
    out_ref[0] = jnp.sum(mask * tile, axis=0, keepdims=True)                    # (1, 8)


def _mano_loss_sums(slab, pvgt, regcat, *, jn, vsn, b3):
    steps, _, w = slab.shape
    vn = pvgt.shape[2]
    kernel = functools.partial(_mano_loss_kernel, jn=jn, vsn=vsn, b3=b3)
    return pl.pallas_call(
        kernel,
        out_shape=jax.ShapeDtypeStruct((steps, 1, 8), jnp.float32),
        grid_spec=pltpu.PrefetchScalarGridSpec(
            num_scalar_prefetch=0,
            grid=(steps,),
            in_specs=[
                pl.BlockSpec((1, b3, w), lambda s: (s, 0, 0)),          # packed slab
                pl.BlockSpec((1, 2 * b3, vn), lambda s: (s, 0, 0)),     # [pred;gt] verts
                pl.BlockSpec((vn, jn + vsn), lambda s: (0, 0)),         # [jreg^T|dsub^T]
            ],
            out_specs=pl.BlockSpec((1, 1, 8), lambda s: (s, 0, 0)),
        ),
        compiler_params=pltpu.CompilerParams(
            dimension_semantics=("parallel",)),
    )(slab, pvgt, regcat)


# ------------------------------- JAX glue -------------------------------------------
def loss_forward(meta_data, preds, j_reg, d_sub):
    steps = len(meta_data)

    # Stack the step axis first, then do ONE transpose/reshape per logical tensor.
    def stack_m(key):
        return jnp.stack([meta_data[s][key] for s in range(steps)], axis=0)

    def stack_p(key):
        return jnp.stack([preds[s][-1][key] for s in range(steps)], axis=0)

    gt_j = stack_m('gt_joints')          # (S, B, J, 3)
    gt_v = stack_m('gt_vertices')        # (S, B, V, 3)
    gt2d = stack_m('2d_joints_mesh')     # (S, B, J, 2)
    mano_valid = stack_m('mano_valid')   # (S, B)
    bbox_valid = stack_m('bbox_valid')   # (S, B)
    p_j = stack_p('pred_3d_joints')      # (S, B, J, 3)
    p_v = stack_p('pred_vertices')       # (S, B, V, 3)
    p_vs = stack_p('pred_vertices_sub')  # (S, B, VSUB, 3)
    hm = stack_p('joints_hm')            # (S, B, J, 2)
    cam = stack_p('pred_cam').astype(jnp.float32)   # (S, B, 3)

    mask = (mano_valid * bbox_valid).astype(jnp.float32)    # (S, B)

    bsz = gt_j.shape[1]
    jn = gt_j.shape[2]
    vn = gt_v.shape[2]
    vsn = p_vs.shape[2]
    b3 = 3 * bsz

    def rows3(x):                                   # (S,B,N,3) -> (S,B*3,N)
        s, b, n, _ = x.shape
        return jnp.transpose(x, (0, 1, 3, 2)).reshape(s, b * 3, n).astype(jnp.float32)

    def rows2_pad(x):                               # (S,B,N,2) -> (S,B*3,N), z row = 0
        s, b, n, _ = x.shape
        xt = jnp.transpose(x, (0, 1, 3, 2))
        xt = jnp.concatenate([xt, jnp.zeros((s, b, 1, n), x.dtype)], axis=2)
        return xt.reshape(s, b * 3, n).astype(jnp.float32)

    gtj_r = rows3(gt_j)
    pj_r = rows3(p_j)
    pvs_r = rows3(p_vs)
    gtv_r = rows3(gt_v)
    pv_r = rows3(p_v)
    gt2d_r = rows2_pad(gt2d)
    hm_r = rows2_pad(hm)

    zeros = jnp.zeros_like(cam[..., 0])
    cam_s_rows = jnp.stack([cam[..., 0], cam[..., 0], zeros], axis=-1).reshape(steps, b3)
    cam_t_rows = jnp.stack([cam[..., 1], cam[..., 2], zeros], axis=-1).reshape(steps, b3)
    mask_rows = jnp.repeat(mask, 3, axis=1)                                    # (S, B*3)
    aux = jnp.stack([mask_rows, cam_s_rows, cam_t_rows, jnp.zeros_like(mask_rows)],
                    axis=-1)                                                   # (S, B*3, 4)

    # One slab for all J-wide tensors + aux + sub-vertices; one slab for vertices.
    slab = jnp.concatenate([gtj_r, pj_r, gt2d_r, hm_r, aux, pvs_r], axis=-1)   # (S,B3,4J+4+VSUB)
    pvgt = jnp.concatenate([pv_r, gtv_r], axis=1)                              # (S, 2*B3, V)
    regcat = jnp.concatenate(
        [jnp.transpose(j_reg), jnp.transpose(d_sub)], axis=1).astype(jnp.float32)  # (V, J+VSUB)

    sums = _mano_loss_sums(slab, pvgt, regcat, jn=jn, vsn=vsn, b3=b3)          # (S, 1, 8)

    nvalid_all = jnp.sum(mask, axis=1)                                         # (S,)

    loss_sum = jnp.zeros((1,), jnp.float32)
    loss_items = {}
    for step in range(steps):
        nvalid = nvalid_all[step]
        safe_n = jnp.maximum(nvalid, 1.0)

        def masked_mean(s, per_item):
            return jnp.where(nvalid > 0, s / (safe_n * per_item), 0.0)

        s = sums[step, 0]                                   # (8,)
        loss_3d = masked_mean(s[0], jn * 3)
        loss_3d_reg = masked_mean(s[1], jn * 3)
        loss_vert = masked_mean(s[2], vn * 3)
        loss_vert_sub = masked_mean(s[3], vsn * 3)
        loss_hm = masked_mean(s[4], jn * 2)
        loss_2d = masked_mean(s[5], jn * 2)
        loss_2d_reg = masked_mean(s[6], jn * 2)

        ls = (LOSS_W['vertices'] * loss_vert
              + LOSS_W['vertices_sub'] * loss_vert_sub
              + LOSS_W['joints_3d'] * loss_3d
              + LOSS_W['joints_3d_from_mesh'] * loss_3d_reg
              + LOSS_W['joints_hm'] * loss_hm
              + LOSS_W['joints_2d'] * loss_2d
              + LOSS_W['joints_2d_from_mesh'] * loss_2d_reg)

        loss_sum = loss_sum + ls
        loss_items.update({
            f'loss_sum_{step}': ls,
            f'loss_vertices_{step}': loss_vert,
            f'loss_vertices_sub_{step}': loss_vert_sub,
            f'loss_3d_joints_{step}': loss_3d,
            f'loss_3d_joints_reg_{step}': loss_3d_reg,
            f'loss_joints_hm_{step}': loss_hm,
            f'loss_2d_joints_{step}': loss_2d,
            f'loss_2d_joints_reg_{step}': loss_2d_reg,
        })
        # TODO(synk): 'aux_outputs' and 'eventhands' branches of forward() omitted.
    return loss_sum, loss_items


# --------------------------------- demo ---------------------------------------------
if __name__ == "__main__":
    key = jax.random.PRNGKey(0)
    keys = jax.random.split(key, 24)

    # Deterministic synthetic "parameters": joint regressor & mesh downsample matrix.
    j_reg = jax.random.uniform(keys[0], (J, V), jnp.float32)
    j_reg = j_reg / jnp.sum(j_reg, axis=1, keepdims=True)
    d_sub = jax.random.uniform(keys[1], (VSUB, V), jnp.float32)
    d_sub = d_sub / jnp.sum(d_sub, axis=1, keepdims=True)

    meta_data, preds = [], []
    ki = 2
    for step in range(STEPS):
        meta_data.append({
            'bbox_valid': jnp.array([1.0, 1.0], jnp.float32),
            'mano_valid': jnp.array([1.0, 1.0 if step == 0 else 0.0], jnp.float32),
            'gt_joints': 0.1 * jax.random.normal(keys[ki + 0], (B, J, 3), jnp.float32),
            'gt_vertices': 0.1 * jax.random.normal(keys[ki + 1], (B, V, 3), jnp.float32),
            '2d_joints_mesh': jax.random.uniform(keys[ki + 2], (B, J, 2), jnp.float32),
        })
        preds.append([{
            'pred_3d_joints': 0.1 * jax.random.normal(keys[ki + 3], (B, J, 3), jnp.float32),
            'pred_vertices': 0.1 * jax.random.normal(keys[ki + 4], (B, V, 3), jnp.float32),
            'pred_vertices_sub': 0.1 * jax.random.normal(keys[ki + 5], (B, VSUB, 3), jnp.float32),
            'pred_cam': jax.random.normal(keys[ki + 6], (B, 3), jnp.float32),
            'joints_hm': jax.random.uniform(keys[ki + 7], (B, J, 2), jnp.float32),
        }])
        ki += 8

    fwd = jax.jit(loss_forward)
    loss_sum, loss_items = fwd(meta_data, preds, j_reg, d_sub)
    jax.block_until_ready(loss_sum)
    jax.block_until_ready(loss_items)
    print("KERNEL_OK")
</pallas_src>

<mosaic_0001>
module attributes {stable_mosaic.version = 11 : i64} {
  func.func @_mano_loss_kernel(%arg0: i32, %arg1: memref<1x6x104xf32, #tpu.memory_space<vmem>>, %arg2: memref<1x12x64xf32, #tpu.memory_space<vmem>>, %arg3: memref<64x37xf32, #tpu.memory_space<vmem>>, %arg4: memref<1x1x8xf32, #tpu.memory_space<vmem>>) attributes {dimension_semantics = [#tpu.dimension_semantics<parallel>], iteration_bounds = array<i64: 2>, scalar_prefetch = 0 : i64, scratch_operands = 0 : i64, tpu.core_type = #tpu.core_type<tc>, window_params = [{transform_indices = @transform_0, window_bounds = array<i64: 1, 6, 104>}, {transform_indices = @transform_1, window_bounds = array<i64: 1, 12, 64>}, {pipeline_mode = #tpu.pipeline_mode<synchronous>, transform_indices = @transform_2, window_bounds = array<i64: 64, 37>}, {transform_indices = @transform_3, window_bounds = array<i64: 1, 1, 8>}]} {
    %c0 = arith.constant 0 : index
    %c0_0 = arith.constant 0 : index
    %c0_1 = arith.constant 0 : index
    %0 = vector.load %arg1[%c0, %c0_0, %c0_1] : memref<1x6x104xf32, #tpu.memory_space<vmem>>, vector<1x6x104xf32>
    %1 = vector.shape_cast %0 : vector<1x6x104xf32> to vector<6x104xf32>
    %c0_2 = arith.constant 0 : index
    %c0_3 = arith.constant 0 : index
    %c0_4 = arith.constant 0 : index
    %2 = vector.load %arg2[%c0_2, %c0_3, %c0_4] : memref<1x12x64xf32, #tpu.memory_space<vmem>>, vector<1x12x64xf32>
    %3 = vector.shape_cast %2 : vector<1x12x64xf32> to vector<12x64xf32>
    %c0_5 = arith.constant 0 : index
    %c0_6 = arith.constant 0 : index
    %4 = vector.load %arg3[%c0_5, %c0_6] : memref<64x37xf32, #tpu.memory_space<vmem>>, vector<64x37xf32>
    %5 = vector.extract_strided_slice %1 {offsets = [0, 0], sizes = [6, 21], strides = [1, 1]} : vector<6x104xf32> to vector<6x21xf32>
    %6 = vector.extract_strided_slice %1 {offsets = [0, 21], sizes = [6, 21], strides = [1, 1]} : vector<6x104xf32> to vector<6x21xf32>
    %7 = vector.extract_strided_slice %1 {offsets = [0, 42], sizes = [6, 21], strides = [1, 1]} : vector<6x104xf32> to vector<6x21xf32>
    %8 = vector.extract_strided_slice %1 {offsets = [0, 63], sizes = [6, 21], strides = [1, 1]} : vector<6x104xf32> to vector<6x21xf32>
    %9 = vector.extract_strided_slice %1 {offsets = [0, 84], sizes = [6, 4], strides = [1, 1]} : vector<6x104xf32> to vector<6x4xf32>
    %10 = vector.extract_strided_slice %1 {offsets = [0, 88], sizes = [6, 16], strides = [1, 1]} : vector<6x104xf32> to vector<6x16xf32>
    %11 = vector.extract_strided_slice %9 {offsets = [0, 0], sizes = [6, 1], strides = [1, 1]} : vector<6x4xf32> to vector<6x1xf32>
    %12 = vector.extract_strided_slice %9 {offsets = [0, 1], sizes = [6, 1], strides = [1, 1]} : vector<6x4xf32> to vector<6x1xf32>
    %13 = vector.extract_strided_slice %9 {offsets = [0, 2], sizes = [6, 1], strides = [1, 1]} : vector<6x4xf32> to vector<6x1xf32>
    %14 = vector.extract_strided_slice %3 {offsets = [0, 0], sizes = [6, 64], strides = [1, 1]} : vector<12x64xf32> to vector<6x64xf32>
    %15 = vector.extract_strided_slice %3 {offsets = [6, 0], sizes = [6, 64], strides = [1, 1]} : vector<12x64xf32> to vector<6x64xf32>
    %cst = arith.constant dense<0.000000e+00> : vector<12x37xf32>
    %16 = tpu.matmul %3, %4, %cst {dimension_numbers = #tpu.dot_dimension_numbers<[1], [0], [0], [1], [0, 0, 1, 1], [], []>} : vector<12x64xf32>, vector<64x37xf32>, vector<12x37xf32> -> vector<12x37xf32>
    %17 = vector.extract_strided_slice %16 {offsets = [0, 0], sizes = [6, 21], strides = [1, 1]} : vector<12x37xf32> to vector<6x21xf32>
    %18 = vector.extract_strided_slice %16 {offsets = [6, 21], sizes = [6, 16], strides = [1, 1]} : vector<12x37xf32> to vector<6x16xf32>
    %19 = vector.extract_strided_slice %5 {offsets = [0, 0], sizes = [6, 1], strides = [1, 1]} : vector<6x21xf32> to vector<6x1xf32>
    %20 = vector.extract_strided_slice %6 {offsets = [0, 0], sizes = [6, 1], strides = [1, 1]} : vector<6x21xf32> to vector<6x1xf32>
    %21 = vector.extract_strided_slice %17 {offsets = [0, 0], sizes = [6, 1], strides = [1, 1]} : vector<6x21xf32> to vector<6x1xf32>
    %22 = vector.broadcast %19 : vector<6x1xf32> to vector<6x21xf32>
    %23 = arith.subf %5, %22 : vector<6x21xf32>
    %24 = vector.broadcast %20 : vector<6x1xf32> to vector<6x21xf32>
    %25 = arith.subf %6, %24 : vector<6x21xf32>
    %26 = arith.subf %23, %25 : vector<6x21xf32>
    %27 = math.absf %26 : vector<6x21xf32>
    %cst_7 = arith.constant 0.00999999977 : f32
    %28 = vector.broadcast %cst_7 : f32 to vector<6x21xf32>
    %29 = arith.cmpf olt, %27, %28 : vector<6x21xf32>
    %cst_8 = arith.constant 5.000000e-01 : f32
    %30 = vector.broadcast %cst_8 : f32 to vector<6x21xf32>
    %31 = arith.mulf %30, %27 : vector<6x21xf32>
    %32 = arith.mulf %31, %27 : vector<6x21xf32>
    %cst_9 = arith.constant 0.00999999977 : f32
    %33 = vector.broadcast %cst_9 : f32 to vector<6x21xf32>
    %34 = arith.divf %32, %33 : vector<6x21xf32>
    %cst_10 = arith.constant 5.000000e-03 : f32
    %35 = vector.broadcast %cst_10 : f32 to vector<6x21xf32>
    %36 = arith.subf %27, %35 : vector<6x21xf32>
    %37 = arith.select %29, %34, %36 : vector<6x21xi1>, vector<6x21xf32>
    %cst_11 = arith.constant dense<0.000000e+00> : vector<6xf32>
    %38 = vector.multi_reduction <add>, %37, %cst_11 [1] : vector<6x21xf32> to vector<6xf32>
    %39 = vector.shape_cast %38 : vector<6xf32> to vector<6x1xf32>
    %40 = vector.broadcast %19 : vector<6x1xf32> to vector<6x21xf32>
    %41 = arith.subf %5, %40 : vector<6x21xf32>
    %42 = vector.broadcast %21 : vector<6x1xf32> to vector<6x21xf32>
    %43 = arith.subf %17, %42 : vector<6x21xf32>
    %44 = arith.subf %41, %43 : vector<6x21xf32>
    %45 = math.absf %44 : vector<6x21xf32>
    %cst_12 = arith.constant 0.00999999977 : f32
    %46 = vector.broadcast %cst_12 : f32 to vector<6x21xf32>
    %47 = arith.cmpf olt, %45, %46 : vector<6x21xf32>
    %cst_13 = arith.constant 5.000000e-01 : f32
    %48 = vector.broadcast %cst_13 : f32 to vector<6x21xf32>
    %49 = arith.mulf %48, %45 : vector<6x21xf32>
    %50 = arith.mulf %49, %45 : vector<6x21xf32>
    %cst_14 = arith.constant 0.00999999977 : f32
    %51 = vector.broadcast %cst_14 : f32 to vector<6x21xf32>
    %52 = arith.divf %50, %51 : vector<6x21xf32>
    %cst_15 = arith.constant 5.000000e-03 : f32
    %53 = vector.broadcast %cst_15 : f32 to vector<6x21xf32>
    %54 = arith.subf %45, %53 : vector<6x21xf32>
    %55 = arith.select %47, %52, %54 : vector<6x21xi1>, vector<6x21xf32>
    %cst_16 = arith.constant dense<0.000000e+00> : vector<6xf32>
    %56 = vector.multi_reduction <add>, %55, %cst_16 [1] : vector<6x21xf32> to vector<6xf32>
    %57 = vector.shape_cast %56 : vector<6xf32> to vector<6x1xf32>
    %58 = vector.broadcast %19 : vector<6x1xf32> to vector<6x64xf32>
    %59 = arith.subf %15, %58 : vector<6x64xf32>
    %60 = vector.broadcast %21 : vector<6x1xf32> to vector<6x64xf32>
    %61 = arith.subf %14, %60 : vector<6x64xf32>
    %62 = arith.subf %59, %61 : vector<6x64xf32>
    %63 = math.absf %62 : vector<6x64xf32>
    %cst_17 = arith.constant 0.00999999977 : f32
    %64 = vector.broadcast %cst_17 : f32 to vector<6x64xf32>
    %65 = arith.cmpf olt, %63, %64 : vector<6x64xf32>
    %cst_18 = arith.constant 5.000000e-01 : f32
    %66 = vector.broadcast %cst_18 : f32 to vector<6x64xf32>
    %67 = arith.mulf %66, %63 : vector<6x64xf32>
    %68 = arith.mulf %67, %63 : vector<6x64xf32>
    %cst_19 = arith.constant 0.00999999977 : f32
    %69 = vector.broadcast %cst_19 : f32 to vector<6x64xf32>
    %70 = arith.divf %68, %69 : vector<6x64xf32>
    %cst_20 = arith.constant 5.000000e-03 : f32
    %71 = vector.broadcast %cst_20 : f32 to vector<6x64xf32>
    %72 = arith.subf %63, %71 : vector<6x64xf32>
    %73 = arith.select %65, %70, %72 : vector<6x64xi1>, vector<6x64xf32>
    %cst_21 = arith.constant dense<0.000000e+00> : vector<6xf32>
    %74 = vector.multi_reduction <add>, %73, %cst_21 [1] : vector<6x64xf32> to vector<6xf32>
    %75 = vector.shape_cast %74 : vector<6xf32> to vector<6x1xf32>
    %76 = vector.broadcast %19 : vector<6x1xf32> to vector<6x16xf32>
    %77 = arith.subf %18, %76 : vector<6x16xf32>
    %78 = vector.broadcast %21 : vector<6x1xf32> to vector<6x16xf32>
    %79 = arith.subf %10, %78 : vector<6x16xf32>
    %80 = arith.subf %77, %79 : vector<6x16xf32>
    %81 = math.absf %80 : vector<6x16xf32>
    %cst_22 = arith.constant 0.00999999977 : f32
    %82 = vector.broadcast %cst_22 : f32 to vector<6x16xf32>
    %83 = arith.cmpf olt, %81, %82 : vector<6x16xf32>
    %cst_23 = arith.constant 5.000000e-01 : f32
    %84 = vector.broadcast %cst_23 : f32 to vector<6x16xf32>
    %85 = arith.mulf %84, %81 : vector<6x16xf32>
    %86 = arith.mulf %85, %81 : vector<6x16xf32>
    %cst_24 = arith.constant 0.00999999977 : f32
    %87 = vector.broadcast %cst_24 : f32 to vector<6x16xf32>
    %88 = arith.divf %86, %87 : vector<6x16xf32>
    %cst_25 = arith.constant 5.000000e-03 : f32
    %89 = vector.broadcast %cst_25 : f32 to vector<6x16xf32>
    %90 = arith.subf %81, %89 : vector<6x16xf32>
    %91 = arith.select %83, %88, %90 : vector<6x16xi1>, vector<6x16xf32>
    %cst_26 = arith.constant dense<0.000000e+00> : vector<6xf32>
    %92 = vector.multi_reduction <add>, %91, %cst_26 [1] : vector<6x16xf32> to vector<6xf32>
    %93 = vector.shape_cast %92 : vector<6xf32> to vector<6x1xf32>
    %94 = arith.subf %8, %7 : vector<6x21xf32>
    %95 = arith.mulf %94, %94 : vector<6x21xf32>
    %cst_27 = arith.constant dense<0.000000e+00> : vector<6xf32>
    %96 = vector.multi_reduction <add>, %95, %cst_27 [1] : vector<6x21xf32> to vector<6xf32>
    %97 = vector.shape_cast %96 : vector<6xf32> to vector<6x1xf32>
    %98 = vector.broadcast %20 : vector<6x1xf32> to vector<6x21xf32>
    %99 = arith.subf %6, %98 : vector<6x21xf32>
    %100 = vector.broadcast %21 : vector<6x1xf32> to vector<6x21xf32>
    %101 = arith.subf %17, %100 : vector<6x21xf32>
    %102 = vector.broadcast %13 : vector<6x1xf32> to vector<6x21xf32>
    %103 = arith.addf %99, %102 : vector<6x21xf32>
    %104 = vector.broadcast %12 : vector<6x1xf32> to vector<6x21xf32>
    %105 = arith.mulf %104, %103 : vector<6x21xf32>
    %106 = arith.subf %7, %105 : vector<6x21xf32>
    %107 = arith.mulf %106, %106 : vector<6x21xf32>
    %cst_28 = arith.constant dense<0.000000e+00> : vector<6xf32>
    %108 = vector.multi_reduction <add>, %107, %cst_28 [1] : vector<6x21xf32> to vector<6xf32>
    %109 = vector.shape_cast %108 : vector<6xf32> to vector<6x1xf32>
    %110 = vector.broadcast %13 : vector<6x1xf32> to vector<6x21xf32>
    %111 = arith.addf %101, %110 : vector<6x21xf32>
    %112 = vector.broadcast %12 : vector<6x1xf32> to vector<6x21xf32>
    %113 = arith.mulf %112, %111 : vector<6x21xf32>
    %114 = arith.subf %7, %113 : vector<6x21xf32>
    %115 = arith.mulf %114, %114 : vector<6x21xf32>
    %cst_29 = arith.constant dense<0.000000e+00> : vector<6xf32>
    %116 = vector.multi_reduction <add>, %115, %cst_29 [1] : vector<6x21xf32> to vector<6xf32>
    %117 = vector.shape_cast %116 : vector<6xf32> to vector<6x1xf32>
    %cst_30 = arith.constant 0.000000e+00 : f32
    %118 = vector.broadcast %cst_30 : f32 to vector<6x1xf32>
    %119 = tpu.concatenate %39, %57, %75, %93, %97, %109, %117, %118 in 1 : vector<6x1xf32>, vector<6x1xf32>, vector<6x1xf32>, vector<6x1xf32>, vector<6x1xf32>, vector<6x1xf32>, vector<6x1xf32>, vector<6x1xf32> -> vector<6x8xf32>
    %120 = vector.broadcast %11 : vector<6x1xf32> to vector<6x8xf32>
    %121 = arith.mulf %120, %119 : vector<6x8xf32>
    %cst_31 = arith.constant dense<0.000000e+00> : vector<8xf32>
    %122 = vector.multi_reduction <add>, %121, %cst_31 [0] : vector<6x8xf32> to vector<8xf32>
    %123 = vector.shape_cast %122 : vector<8xf32> to vector<1x8xf32>
    %c0_32 = arith.constant 0 : index
    %c0_33 = arith.constant 0 : index
    %c0_34 = arith.constant 0 : index
    %124 = vector.load %arg4[%c0_32, %c0_33, %c0_34] : memref<1x1x8xf32, #tpu.memory_space<vmem>>, vector<1x1x8xf32>
    %125 = vector.shape_cast %124 : vector<1x1x8xf32> to vector<1x8xf32>
    %126 = vector.shape_cast %123 : vector<1x8xf32> to vector<1x1x8xf32>
    tpu.vector_store %arg4[%c0_32, %c0_33, %c0_34], %126 {strides = array<i32>} : memref<1x1x8xf32, #tpu.memory_space<vmem>>, vector<1x1x8xf32>,
    return
  }
  func.func @transform_0(%arg0: i32) -> (i32, i32, i32) {
    %c0_i32 = arith.constant 0 : i32
    %c0_i32_0 = arith.constant 0 : i32
    %c0_i32_1 = arith.constant 0 : i32
    return %arg0, %c0_i32, %c0_i32_0 : i32, i32, i32
  }
  func.func @transform_1(%arg0: i32) -> (i32, i32, i32) {
    %c0_i32 = arith.constant 0 : i32
    %c0_i32_0 = arith.constant 0 : i32
    %c0_i32_1 = arith.constant 0 : i32
    return %arg0, %c0_i32, %c0_i32_0 : i32, i32, i32
  }
  func.func @transform_2(%arg0: i32) -> (i32, i32) {
    %c0_i32 = arith.constant 0 : i32
    %c0_i32_0 = arith.constant 0 : i32
    %c0_i32_1 = arith.constant 0 : i32
    return %c0_i32, %c0_i32_0 : i32, i32
  }
  func.func @transform_3(%arg0: i32) -> (i32, i32, i32) {
    %c0_i32 = arith.constant 0 : i32
    %c0_i32_0 = arith.constant 0 : i32
    %c0_i32_1 = arith.constant 0 : i32
    return %arg0, %c0_i32, %c0_i32_0 : i32, i32, i32
  }
}

</mosaic_0001>

<bundles_post_ra>
// kernel: loss_forward.1
= control target key start
LH: loop header
LB: loop body
LE: loop exit
PB: predicated region body
PF: predicated region fallthrough
CT: control target
= control target key end

     0   :  { %s673_s12 = smov 0   ;;  %s760_s0 = inlined_call_operand.vmem [shape: f32[2,6,104], index: 0, kind: input, shape index: {}]   ;;  %s761_s1 = inlined_call_operand.vmem [shape: f32[2,12,64], index: 1, kind: input, shape index: {}]   ;;  %s762_s2 = inlined_call_operand.vmem [shape: f32[64,37], index: 2, kind: input, shape index: {}]   ;;  %s763_s3 = inlined_call_operand.vmem [shape: f32[2,1,8], index: 3, kind: output, shape index: {}]  }
   0x1 LB: > { %s545_s13 = sadd.s32 4294967295, %s640_s12   ;;  %p549_p0 = scmp.ge.s32.totalorder %s640_s12, 1  ;;  %s640_s12 = sphi %s673_s12, %s13_s12  }
   0x2   : > { %p146_p1 = scmp.lt.s32.totalorder %s640_s12, 3 }
   0x4   : > { %p147_p2 = pnand %p549_p0, %p146_p1 }
   0x5   : > { %v187_v0 = vld [vmem:[%s762_s2] sm:$0xff] (!%p147_p2)  ;;  %v188_v1 = vld [vmem:[%s762_s2 + $0x8] sm:$0xff] (!%p147_p2)  ;;  %v189_v2 = vld [vmem:[%s762_s2 + $0x10] sm:$0xff] (!%p147_p2)  ;;  %p172_p3 = scmp.lt.s32.totalorder (!%p147_p2), %s545_s13, 1  ;;  %v642_v5 = vmov (!%p147_p2), 86   ;;  %v643_v9 = vmov (!%p147_p2), 0  }
   0x6   : > { %150 = sbr.rel (%p147_p2) target bundleno = 824 (0x338), region = 32  ;;  %v593_v3 = vpack.c.bf16 (!%p147_p2), %v188_v1, %v187_v0  ;;  %v190_v4 = vld [vmem:[%s762_s2 + $0x18] sm:$0xff] (!%p147_p2)  ;;  %630 = vset.pattern.permute.xlu1 (!%p147_p2), %v642_v5  ;;  %v191_v7 = vld [vmem:[%s762_s2 + $0x20] sm:$0xff] (!%p147_p2)  ;;  %v192_v8 = vld [vmem:[%s762_s2 + $0x28] sm:$0xff] (!%p147_p2)  ;;  %628 = vset.pattern.permute.xlu0 (!%p147_p2), %v643_v9  ;;  %vm195_vm0 = vcmask (!%p147_p2), 523264   ;;  %v644_v16 = vmov (!%p147_p2), 85  }
   0x7   : > { %v597_v6 = vpack.c.bf16 (!%p147_p2), %v190_v4, %v189_v2  ;;  %v601_v10 = vpack.c.bf16 (!%p147_p2), %v192_v8, %v191_v7  ;;  %v193_v11 = vld [vmem:[%s762_s2 + $0x30] sm:$0xff] (!%p147_p2)  ;;  %v194_v12 = vld [vmem:[%s762_s2 + $0x38] sm:$0xff] (!%p147_p2)  ;;  %s645_s11 = smov (!%p147_p2), 21   ;;  %v646_v26 = vmov (!%p147_p2), 21   ;;  %s647_s14 = smov (!%p147_p2), 61   ;;  %vm301_vm2 = vcmask (!%p147_p2), 168960  }
   0x8   : > { %594 = vmatprep.subr.bf16.mxu0 (!%p147_p2), %v593_v3  ;;  %v605_v15 = vpack.c.bf16 (!%p147_p2), %v194_v12, %v193_v11  ;;  %s648_s15 = smov (!%p147_p2), 42   ;;  %s649_s16 = smov (!%p147_p2), 107   ;;  %vm346_vm4 = vcmask (!%p147_p2), 523270   ;;  %vm350_vm8 = vcmask (!%p147_p2), 519168   ;;  %vm386_vm10 = vcmask (!%p147_p2), 130054  }
   0x9   : > { %596 = vmatpush3.bf16.msra.mxu0 (!%p147_p2), %v593_v3  ;;  %s650_s17 = smov (!%p147_p2), 65   ;;  %s651_s18 = smov (!%p147_p2), 86   ;;  %vm457_vm11 = vcmask (!%p147_p2), 7168   ;;  %vm446_vm12 = vcmask (!%p147_p2), 1041408   ;;  %vm459_vm13 = vcmask (!%p147_p2), 15360   ;;  %vm390_vm14 = vcmask (!%p147_p2), 125952  }
   0xa   : > { %598 = vmatprep.subr.bf16.mxu0 (!%p147_p2), %v597_v6  ;;  %vm461_vm15 = vcmask (!%p147_p2), 23552  }
   0xd   : > { %s765_s13 = smov (!%p172_p3, %s545_s13), 1  ;;  %600 = vmatpush3.bf16.msra.mxu0 %v597_v6 }
   0xe   : > { %s550_s26 = sshll.u32 %s765_s13, 3  ;;  %s563_s27 = sshll.u32 %s765_s13, 4  ;;  %602 = vmatprep.subr.bf16.mxu0 %v601_v10 }
   0xf   : > { %s175_s5 = scalar_lea.vmem %s760_s0, %s550_s26  ;;  %s180_s8 = scalar_lea.vmem %s761_s1, %s563_s27 }
  0x10   : > { %v715_v13 = vld [vmem:[%s175_s5] sm:$0x3f]  ;;  %v186_v17 = vld [vmem:[%s180_s8 + $0x8] sm:$0xf]  ;;  %s183_s21 = scalar_lea.vmem %s763_s3, %s765_s13 }
  0x11   : > { %v185_v14 = vld [vmem:[%s180_s8] sm:$0xff]  ;;  %407 = vperm.xlu1 %630, %v715_v13   ;;  %604 = vmatpush3.bf16.msra.mxu0 %v601_v10 }
  0x12   : > { %590 = vmatprep.mubr.msk.f32.mxu0 %vm195_vm0, %v185_v14  ;;  %606 = vmatprep.subr.bf16.mxu0 %v605_v15 }
  0x15   : > { %631 = vset.pattern.permute.xlu1 %v644_v16  ;;  %608 = vmatpush3.bf16.msra.mxu0 %v605_v15 }
  0x16   : > { %412 = vperm.xlu1 %631, %v715_v13  }
  0x18   : > { %591 = vmatmul.mubr.msk.f32.vlgmr.msra.gmra.mrb[0].mxu0 %vm195_vm0, %v186_v17  ;;  %vm463_vm0 = vcmask 31744  }
  0x1a   : > { %632 = vset.pattern.permute.xlu1 %v643_v9 }
  0x1b   : > { %279 = vperm.xlu1 %632, %v715_v13  }
  0x1f   : > { %394 = vrot.lane.b32.xlu1 %v715_v13, %s645_s11 }
  0x90   : > { %v408_v18 = vpop.permute.xlu1 %407 }
  0x95   : > { %v413_v19 = vpop.permute.xlu1 %412 }
  0x9a   : > { %v280_v20 = vpop.permute.xlu1 %279 }
  0x9b   : > { %v722_v21 = vrot.slane %v280_v20, 2  ;;  %v282_v41 = vsub.f32 %v715_v13, %v280_v20 }
  0x9d   : > { %v325_v29 = vsub.f32 %v186_v17, %v722_v21  ;;  %v324_v43 = vsub.f32 %v185_v14, %v722_v21 }
  0x9e   : > { %v395_v63 = vpop.permute.xlu1 %394 }
  0x9f   : > { %v397_v3 = vsub.f32 %v715_v13, %v395_v63 }
  0xa1   : > { %v398_v8 = vmul.f32 %v397_v3, %v397_v3 }
  0xeb   : > { %v724_v22 = vpop.f32.mrb[0].mxu0 }
  0xec   : > { %v355_v23 = vsub.f32 %v724_v22, %v722_v21  ;;  %v268_v24 = vpop.f32.mrb[1].mxu0 }
  0xed   : > { %v354_v25 = vsub.f32 %v268_v24, %v722_v21  ;;  %307 = vperm.xlu0 %628, %v268_v24  }
  0xf1   : > { %629 = vset.pattern.permute.xlu0 %v646_v26 }
  0xf2   : > { %284 = vperm.xlu0 %629, %v715_v13  }
 0x16c   : > { %v308_v27 = vpop.permute.xlu0 %307 }
 0x16d   : > { %v310_v28 = vsub.f32 %v268_v24, %v308_v27  ;;  %v326_v30 = vsub.f32 %v185_v14, %v308_v27  ;;  %v356_v31 = vsub.f32 %v715_v13, %v308_v27 }
 0x16f   : > { %v328_v32 = vrot.slane %v326_v30, 2  ;;  %v429_v33 = vadd.f32 %v408_v18, %v310_v28  ;;  %v358_v34 = vrot.slane %v356_v31, 2  ;;  %v311_v42 = vsub.f32 %v282_v41, %v310_v28 }
 0x171   : > { %v331_v35 = vsub.f32 %v325_v29, %v328_v32  ;;  %v285_v36 = vpop.permute.xlu0 %284  ;;  %359 = vrot.lane.b32.xlu0 %v358_v34, %s647_s14  ;;  %v430_v37 = vmul.f32 %v429_v33, %v413_v19  ;;  %v312_v44 = vand.u32 2147483647, %v311_v42  ;;  %v330_v45 = vsub.f32 %v324_v43, %v328_v32 }
 0x172   : > { %v287_v38 = vsub.f32 %v715_v13, %v285_v36 }
 0x173   : > { %432 = vrot.lane.b32.xlu1 %v430_v37, %s648_s15  ;;  %v332_v46 = vand.u32 2147483647, %v330_v45  ;;  %v314_v47 = vmul.f32 0.5, %v312_v44  ;;  %v556_v52 = vadd.f32 -0.005, %v312_v44 }
 0x174   : > { %v410_v39 = vadd.f32 %v408_v18, %v287_v38  ;;  %vm313_vm1 = vcmp.lt.f32.partialorder %v312_v44, 0.01  ;;  %v333_v2 = vand.u32 2147483647, %v331_v35 }
 0x175   : > { %v315_v48 = vmul.f32 %v314_v47, %v312_v44  ;;  %v336_v49 = vmul.f32 0.5, %v332_v46  ;;  %v557_v55 = vadd.f32 -0.005, %v332_v46  ;;  %vm334_vm3 = vcmp.lt.f32.partialorder %v332_v46, 0.01 }
 0x176   : > { %v415_v40 = vmul.f32 %v413_v19, %v410_v39  ;;  %v337_v10 = vmul.f32 0.5, %v333_v2  ;;  %v558_v28 = vadd.f32 -0.005, %v333_v2  ;;  %vm335_vm7 = vcmp.lt.f32.partialorder %v333_v2, 0.01 }
 0x177   : > { %v316_v50 = vmul.f32 100.0, %v315_v48  ;;  %v338_v51 = vmul.f32 %v336_v49, %v332_v46  ;;  %v652_v39 = vmov 84  }
 0x178   : > { %417 = vrot.lane.b32.xlu0 %v415_v40, %s645_s11  ;;  %v339_v16 = vmul.f32 %v337_v10, %v333_v2 }
 0x179   : > { %v318_v53 = vsel %vm313_vm1, %v316_v50, %v556_v52  ;;  %v340_v54 = vmul.f32 100.0, %v338_v51  ;;  %633 = vset.pattern.permute.xlu0 %v652_v39  ;;  %vm465_vm1 = vcmask 39936  }
 0x17a   : > { %v319_v56 = vsel %vm301_vm2, %v318_v53, 0.0 }
 0x17b   : > { %v344_v57 = vsel %vm334_vm3, %v340_v54, %v557_v55  ;;  %vm469_vm3 = vcmask 56320  }
 0x17c   : > { %289 = vrot.lane.b32.xlu0 %v287_v38, %s649_s16  ;;  %v347_v58 = vsel %vm346_vm4, %v344_v57, 0.0  ;;  %vm476_vm4 = vcmask 62464  }
 0x19b   : > { %320 = vadd.xlane.f32.xlu0 %v319_v56 }
 0x19f   : > { %348 = vadd.xlane.f32.xlu0 %v347_v58 }
 0x1e3   : > { %v360_v59 = vpop.permute.xlu0 %359 }
 0x1e4   : > { %v362_v60 = vsub.f32 %v354_v25, %v360_v59  ;;  %v341_v25 = vmul.f32 100.0, %v339_v16  ;;  %v363_v30 = vsub.f32 %v355_v23, %v360_v59 }
 0x1e5   : > { %v433_v14 = vpop.permute.xlu1 %432 }
 0x1e6   : > { %v364_v61 = vand.u32 2147483647, %v362_v60  ;;  %v435_v17 = vsub.f32 %v715_v13, %v433_v14  ;;  %v345_v31 = vsel %vm335_vm7, %v341_v25, %v558_v28  ;;  %v365_v33 = vand.u32 2147483647, %v363_v30 }
 0x1e7   : > { %v351_v32 = vsel %vm350_vm8, %v345_v31, 0.0 }
 0x1e8   : > { %v368_v62 = vmul.f32 0.5, %v364_v61  ;;  %v559_v5 = vadd.f32 -0.005, %v364_v61  ;;  %vm366_vm5 = vcmp.lt.f32.partialorder %v364_v61, 0.01  ;;  %v436_v26 = vmul.f32 %v435_v17, %v435_v17 }
 0x1e9   : > { %v369_v34 = vmul.f32 0.5, %v365_v33  ;;  %v560_v37 = vadd.f32 -0.005, %v365_v33  ;;  %vm367_vm9 = vcmp.lt.f32.partialorder %v365_v33, 0.01 }
 0x1ea   : > { %v418_v0 = vpop.permute.xlu0 %417  ;;  %v370_v1 = vmul.f32 %v368_v62, %v364_v61 }
 0x1eb   : > { %v420_v11 = vsub.f32 %v715_v13, %v418_v0  ;;  %v371_v35 = vmul.f32 %v369_v34, %v365_v33 }
 0x1ec   : > { %v372_v4 = vmul.f32 100.0, %v370_v1 }
 0x1ed   : > { %v421_v18 = vmul.f32 %v420_v11, %v420_v11  ;;  %v373_v36 = vmul.f32 100.0, %v371_v35 }
 0x1ee   : > { %v290_v6 = vpop.permute.xlu0 %289  ;;  %v376_v7 = vsel %vm366_vm5, %v372_v4, %v559_v5  ;;  %vm484_vm5 = vcmask 57344  }
 0x1ef   : > { %v292_v9 = vsub.f32 %v282_v41, %v290_v6  ;;  %380 = vrot.lane.b32.xlu0 %v376_v7, %s649_s16  ;;  %v377_v38 = vsel %vm367_vm9, %v373_v36, %v560_v37 }
 0x1f1   : > { %v293_v12 = vand.u32 2147483647, %v292_v9 }
 0x1f3   : > { %400 = vrot.lane.b32.xlu0 %v398_v8, %s650_s17  ;;  %v295_v15 = vmul.f32 0.5, %v293_v12  ;;  %v555_v24 = vadd.f32 -0.005, %v293_v12  ;;  %vm294_vm6 = vcmp.lt.f32.partialorder %v293_v12, 0.01 }
 0x1f5   : > { %v296_v19 = vmul.f32 %v295_v15, %v293_v12 }
 0x1f7   : > { %423 = vrot.lane.b32.xlu0 %v421_v18, %s651_s18  ;;  %v298_v20 = vmul.f32 100.0, %v296_v19 }
 0x1f9   : > { %v300_v27 = vsel %vm294_vm6, %v298_v20, %v555_v24 }
 0x1fa   : > { %v302_v29 = vsel %vm301_vm2, %v300_v27, 0.0 }
 0x1fb   : > { %438 = vrot.lane.b32.xlu0 %v436_v26, %s651_s18  ;;  %303 = vadd.xlane.f32.xlu1 %v302_v29 }
 0x1ff   : > { %352 = vadd.xlane.f32.xlu1 %v351_v32 }
 0x210   : > { %382 = vrot.lane.b32.xlu1 %v377_v38, %s649_s16 }
 0x228   : > { %v321_v40 = vpop.xlane.xlu0 %320 }
 0x22c   : > { %v349_v21 = vpop.xlane.xlu0 %348 }
 0x22d   : > { %v447_v49 = vrot.slane %v349_v21, 6 }
 0x261   : > { %v381_v22 = vpop.permute.xlu0 %380 }
 0x262   : > { %v387_v43 = vsel %vm386_vm10, %v381_v22, 0.0 }
 0x265   : > { %v401_v23 = vpop.permute.xlu0 %400 }
 0x266   : > { %v403_v41 = vsel %vm301_vm2, %v401_v23, 0.0 }
 0x267   : > { %404 = vadd.xlane.f32.xlu1 %v403_v41 }
 0x269   : > { %v424_v42 = vpop.permute.xlu0 %423 }
 0x26a   : > { %v426_v44 = vsel %vm301_vm2, %v424_v42, 0.0 }
 0x26b   : > { %388 = vadd.xlane.f32.xlu1 %v387_v43 }
 0x26d   : > { %v439_v45 = vpop.permute.xlu0 %438 }
 0x26e   : > { %v441_v46 = vsel %vm301_vm2, %v439_v45, 0.0  ;;  %vm467_vm2 = vcmask 48128  }
 0x26f   : > { %427 = vadd.xlane.f32.xlu1 %v426_v44 }
 0x273   : > { %442 = vadd.xlane.f32.xlu1 %v441_v46 }
 0x288   : > { %v304_v47 = vpop.xlane.xlu1 %303 }
 0x289   : > { %v458_v51 = vsel %vm457_vm11, %v304_v47, %v321_v40 }
 0x28c   : > { %v353_v48 = vpop.xlane.xlu1 %352 }
 0x28d   : > { %v448_v50 = vrot.slane %v353_v48, 6 }
 0x28f   : > { %v449_v52 = vsel %vm446_vm12, %v447_v49, %v448_v50 }
 0x290   : > { %v460_v53 = vsel %vm459_vm13, %v458_v51, %v449_v52  ;;  %v383_v54 = vpop.permute.xlu1 %382 }
 0x291   : > { %v391_v55 = vsel %vm390_vm14, %v383_v54, 0.0 }
 0x292   : > { %392 = vadd.xlane.f32.xlu0 %v391_v55 }
 0x2a8   : > { %472 = vperm.xlu0 %633, %v715_v13  }
 0x2f4   : > { %v405_v56 = vpop.xlane.xlu1 %404 }
 0x2f8   : > { %v389_v57 = vpop.xlane.xlu1 %388 }
 0x2f9   : > { %v453_v60 = vrot.slane %v389_v57, 6 }
 0x2fc   : > { %v428_v58 = vpop.xlane.xlu1 %427 }
 0x300   : > { %v443_v1 = vpop.xlane.xlu1 %442 }
 0x31f   : > { %v393_v59 = vpop.xlane.xlu0 %392 }
 0x320   : > { %v454_v61 = vrot.slane %v393_v59, 6 }
 0x322   : > { %v455_v62 = vsel %vm446_vm12, %v453_v60, %v454_v61 }
 0x323   : > { %v462_v63 = vsel %vm461_vm15, %v460_v53, %v455_v62 }
 0x324   : > { %v464_v0 = vsel %vm463_vm0, %v462_v63, %v405_v56 }
 0x325   : > { %v466_v2 = vsel %vm465_vm1, %v464_v0, %v428_v58 }
 0x326   : > { %v468_v3 = vsel %vm467_vm2, %v466_v2, %v443_v1 }
 0x327   : > { %v470_v13 = vsel %vm469_vm3, %v468_v3, 0.0  ;;  %v473_v4 = vpop.permute.xlu0 %472 }
 0x328   : > { %v475_v5 = vmul.f32 %v473_v4, %v470_v13 }
 0x32a   : > { %v477_v6 = vsel %vm476_vm4, %v475_v5, 0.0 }
 0x32b   : > { %v478_v7 = vrot.slane %v477_v6, 4 }
 0x32d   : > { %v479_v8 = vadd.f32 %v478_v7, %v477_v6 }
 0x32f   : > { %v480_v9 = vrot.slane %v479_v8, 2 }
 0x331   : > { %v481_v10 = vadd.f32 %v480_v9, %v479_v8 }
 0x333   : > { %v482_v11 = vrot.slane %v481_v10, 1 }
 0x335   : > { %v483_v12 = vadd.f32 %v482_v11, %v481_v10 }
 0x337   : > { %485 = vst.msk [vmem:[%s183_s21] sm:$0x1] %vm484_vm5, %v483_v12 }
 0x338 PF: > { %s13_s12 = sadd.s32 1, %s640_s12  }
 0x339   : > { %p10_p4 = scmp.ge.s32.totalorder %s13_s12, 4  }
 0x33b   :  { %12 = sbr.rel (!%p10_p4) target bundleno = 1 (0x1), region = 65 }

</bundles_post_ra>
